<compile_context>
chip_gen: v7x
topology: tpu7x:2x2x1
jax: 0.10.0
libtpu: 0.0.40
codegen_flags: <defaults>
</compile_context>

<pallas_src>
import jax
import jax.numpy as jnp
from jax.experimental import pallas as pl
from jax.experimental.pallas import tpu as pltpu


_LANE = 128
_LANE_W = 4 * _LANE                          # 512-wide lane-dense slab (full vst stores)
_PIPELINE_VMEM_BUDGET = 28 * 1024 * 1024     # 3 streams x 2 buffers resident target
_VMEM_LIMIT_BYTES = 48 * 1024 * 1024         # explicit scoped-VMEM limit (safe on v5e/v6e/v7x)
_SMALL_BYTES = 1 << 20                       # below ~1 MiB of total traffic, let XLA fuse it


def _sublane_multiple(dtype) -> int:
    # f32 -> 8, bf16/f16 -> 16, int8/fp8 -> 32 (sub-32-bit dtypes pack along sublanes).
    itemsize = jnp.dtype(dtype).itemsize
    return max(8, 32 // itemsize)


def _l1_kernel(y_pred_ref, labels_ref, out_ref):
    # Pure VPU elementwise hot path; dtype promotion done here (not in the wrapper)
    # so inputs travel HBM->VMEM in their original (possibly narrower) dtype.
    acc = out_ref.dtype
    out_ref[...] = jnp.abs(y_pred_ref[...].astype(acc) - labels_ref[...].astype(acc))


def l1_loss(y_pred: jax.Array, labels: jax.Array, *, force_pallas: bool = False) -> jax.Array:
    """Elementwise |y_pred - labels| (PyTorch L1Loss module's forward semantics)."""
    assert y_pred.shape == labels.shape, "y_pred and labels must have same shape"

    out_dtype = jnp.result_type(y_pred.dtype, labels.dtype)
    orig_shape = y_pred.shape
    total = y_pred.size

    in_bytes_per_elem = (jnp.dtype(y_pred.dtype).itemsize
                         + jnp.dtype(labels.dtype).itemsize)
    out_bytes_per_elem = jnp.dtype(out_dtype).itemsize
    stream_bytes = total * (in_bytes_per_elem + out_bytes_per_elem)

    def _xla_fallback():
        return jnp.abs(y_pred.astype(out_dtype) - labels.astype(out_dtype))

    if total == 0:
        return jnp.zeros(orig_shape, out_dtype)

    # Tiny problem: a standalone custom call cannot fuse with neighbors and is
    # 100% launch/DMA-setup overhead -- fused XLA is strictly faster.
    if not force_pallas and stream_bytes < _SMALL_BYTES:
        return _xla_fallback()

    # ---- choose a 2-D view with ZERO data movement (no pad / no slice) -------
    if total % _LANE_W == 0:
        # Common case: lane-dense 512-wide slab -> unmasked full-width stores.
        rows, cols = total // _LANE_W, _LANE_W
    elif len(orig_shape) >= 2:
        # Ragged total: keep the native layout; the block's lane extent is the
        # full last dim (always a legal block shape, whatever its size).
        cols = orig_shape[-1]
        rows = total // cols
    else:
        # Ragged 1-D input: single full-extent row.
        rows, cols = 1, total

    sub = max(_sublane_multiple(y_pred.dtype),
              _sublane_multiple(labels.dtype),
              _sublane_multiple(out_dtype))
    row_bytes = cols * (in_bytes_per_elem + out_bytes_per_elem)   # all 3 streams, one row

    # Row tile sized so 3 streams x 2 double-buffers stay within the pipeline budget
    # (~4-5 MiB per array per buffer in the lane-dense case).
    tile_rows = max(sub, (_PIPELINE_VMEM_BUDGET // (2 * row_bytes)) // sub * sub)
    if tile_rows >= rows:
        tile_rows = rows   # single block; a full-extent dim is always a legal block dim

    # Guard: pathologically wide ragged rows that cannot be tiled under the VMEM limit.
    if 2 * tile_rows * row_bytes > _VMEM_LIMIT_BYTES:
        # TODO(synk): lane-dim tiling for huge non-multiple-of-128 last dims;
        # fused XLA abs(sub) is already at the HBM roofline for this case.
        return _xla_fallback()

    yp2 = y_pred.reshape(rows, cols)   # row-major contiguous reshape: free (bitcast)
    lb2 = labels.reshape(rows, cols)

    grid = (pl.cdiv(rows, tile_rows),)   # partial last block handled by Pallas output masking

    out2 = pl.pallas_call(
        _l1_kernel,
        out_shape=jax.ShapeDtypeStruct((rows, cols), out_dtype),
        grid=grid,
        in_specs=[
            pl.BlockSpec((tile_rows, cols), lambda i: (i, 0)),
            pl.BlockSpec((tile_rows, cols), lambda i: (i, 0)),
        ],
        out_specs=pl.BlockSpec((tile_rows, cols), lambda i: (i, 0)),
        compiler_params=pltpu.CompilerParams(
            # Fully independent tiles: shard across TensorCores on multi-TC chips
            # (no-op on single-TC v5e/v6e).
            dimension_semantics=("parallel",),
            vmem_limit_bytes=_VMEM_LIMIT_BYTES,
        ),
        cost_estimate=pl.CostEstimate(
            flops=2 * total,
            transcendentals=0,
            bytes_accessed=stream_bytes,
        ),
    )(yp2, lb2)

    return out2.reshape(orig_shape)   # free reshape; no padded tail to strip


if __name__ == "__main__":
    key = jax.random.PRNGKey(0)
    k1, k2, k3, k4 = jax.random.split(key, 4)

    # Case 1: the module's spec shape (batch, n_label) = (8, 32).
    # total % 512 != 0 -> native-layout (full-extent lane dim) path, forced Pallas.
    batch, n_label = 8, 32
    y_pred = jax.random.normal(k1, (batch, n_label), dtype=jnp.float32)
    labels = jax.random.normal(k2, (batch, n_label), dtype=jnp.float32)
    out = l1_loss(y_pred, labels, force_pallas=True)
    jax.block_until_ready(out)
    ref = jnp.abs(y_pred - labels)
    assert out.shape == ref.shape and out.dtype == ref.dtype
    assert jnp.allclose(out, ref, atol=1e-6), "mismatch vs reference (native-layout path)"

    # Case 2: (8, 64) -> total = 512 -> lane-dense slab path, with in-kernel
    # bf16 -> f32 promotion (inputs stay bf16 in HBM).
    y2 = jax.random.normal(k3, (8, 64), dtype=jnp.bfloat16)
    l2 = jax.random.normal(k4, (8, 64), dtype=jnp.float32)
    out2 = l1_loss(y2, l2, force_pallas=True)
    jax.block_until_ready(out2)
    ref2 = jnp.abs(y2.astype(jnp.float32) - l2)
    assert out2.shape == ref2.shape and out2.dtype == jnp.float32
    assert jnp.allclose(out2, ref2, atol=1e-6), "mismatch vs reference (lane-dense path)"

    # Case 3: auto-dispatch -- this size is tiny, so it takes the fused-XLA fast path.
    out3 = l1_loss(y_pred, labels)
    jax.block_until_ready(out3)
    assert jnp.allclose(out3, ref, atol=1e-6), "mismatch vs reference (auto path)"

    print("KERNEL_OK")
</pallas_src>

<mosaic_0001>
module attributes {stable_mosaic.version = 11 : i64} {
  func.func @_l1_kernel(%arg0: i32, %arg1: memref<8x32xf32, #tpu.memory_space<vmem>>, %arg2: memref<8x32xf32, #tpu.memory_space<vmem>>, %arg3: memref<8x32xf32, #tpu.memory_space<vmem>>) attributes {dimension_semantics = [#tpu.dimension_semantics<parallel>], iteration_bounds = array<i64: 1>, scalar_prefetch = 0 : i64, scratch_operands = 0 : i64, tpu.core_type = #tpu.core_type<tc>, window_params = [{transform_indices = @transform_0, window_bounds = array<i64: 8, 32>}, {transform_indices = @transform_1, window_bounds = array<i64: 8, 32>}, {transform_indices = @transform_2, window_bounds = array<i64: 8, 32>}]} {
    %c0 = arith.constant 0 : index
    %c0_0 = arith.constant 0 : index
    %0 = vector.load %arg1[%c0, %c0_0] : memref<8x32xf32, #tpu.memory_space<vmem>>, vector<8x32xf32>
    %c0_1 = arith.constant 0 : index
    %c0_2 = arith.constant 0 : index
    %1 = vector.load %arg2[%c0_1, %c0_2] : memref<8x32xf32, #tpu.memory_space<vmem>>, vector<8x32xf32>
    %2 = arith.subf %0, %1 : vector<8x32xf32>
    %3 = math.absf %2 : vector<8x32xf32>
    %c0_3 = arith.constant 0 : index
    %c0_4 = arith.constant 0 : index
    %4 = vector.load %arg3[%c0_3, %c0_4] : memref<8x32xf32, #tpu.memory_space<vmem>>, vector<8x32xf32>
    tpu.vector_store %arg3[%c0_3, %c0_4], %3 {strides = array<i32>} : memref<8x32xf32, #tpu.memory_space<vmem>>, vector<8x32xf32>,
    return
  }
  func.func @transform_0(%arg0: i32) -> (i32, i32) {
    %c0_i32 = arith.constant 0 : i32
    %c0_i32_0 = arith.constant 0 : i32
    return %arg0, %c0_i32 : i32, i32
  }
  func.func @transform_1(%arg0: i32) -> (i32, i32) {
    %c0_i32 = arith.constant 0 : i32
    %c0_i32_0 = arith.constant 0 : i32
    return %arg0, %c0_i32 : i32, i32
  }
  func.func @transform_2(%arg0: i32) -> (i32, i32) {
    %c0_i32 = arith.constant 0 : i32
    %c0_i32_0 = arith.constant 0 : i32
    return %arg0, %c0_i32 : i32, i32
  }
}

</mosaic_0001>

<bundles_post_ra>
// kernel: tpu_custom_call.1
= control target key start
LH: loop header
LB: loop body
LE: loop exit
PB: predicated region body
PF: predicated region fallthrough
CT: control target
= control target key end

     0   :  { %7 = vsyncpa [#allocation3], 0  ;;  %s187_s0 = inlined_call_operand.hbm [shape: f32[8,32], index: 0, kind: input, shape index: {}]   ;;  %s188_s1 = inlined_call_operand.hbm [shape: f32[8,32], index: 1, kind: input, shape index: {}]   ;;  %s189_s2 = inlined_call_operand.hbm [shape: f32[8,32], index: 2, kind: output, shape index: {}]  }
   0x1   :  { %8 = vsyncpa [#allocation6], 0 }
   0x2   :  { %9 = vsyncpa [#allocation4], 0  ;;  %s133_s9 = smov [#allocation2]   ;;  %s134_s11 = smov [#allocation5]  }
   0x3   :  { %s16_s10 = sshll.u32 %s133_s9, 4  ;;  %s26_s12 = sshll.u32 %s134_s11, 4  ;;  %s17_s10 = int_to_ptr.vmem [resolvable:$true] %s16_s10  ;;  %s27_s12 = int_to_ptr.vmem [resolvable:$true] %s26_s12 }
   0x4   :  { %s61_s15 = scalar_lea.hbm %s187_s0, 128 }
   0x5   :  { %p62_p0 = scmp.ne.s32.totalorder %s187_s0, %s61_s15  ;;  %p65_p1 = scmp.lt.u32.totalorder %s61_s15, %s187_s0 }
   0x7   :  { %p67_p2 = pnand %p65_p1, %p62_p0 }
   0x9   :  { %70 = shalt.err (!%p67_p2)
}
   0xa   :  { %s71_s20 = scalar_lea.vmem %s17_s10, 128  ;;  %p76_p4 = scmp.lt.s32.totalorder %s17_s10, %s17_s10 }
   0xb   :  { %p72_p3 = scmp.ne.s32.totalorder %s17_s10, %s71_s20  ;;  %p77_p5 = scmp.lt.s32.totalorder %s71_s20, %s71_s20 }
   0xd   :  { %p78_p6 = por %p77_p5, %p76_p4 }
   0xf   :  { %p79_p7 = pnand %p78_p6, %p72_p3 }
  0x11   :  { %82 = shalt.err (!%p79_p7)
}
  0x12   :  { %19 = dma.hbm_to_vmem [thread:$0]  %s187_s0, 128, %s17_s10, [#allocation3]  }
  0x13   :  { %s83_s25 = scalar_lea.hbm %s188_s1, 128 }
  0x14   :  { %p84_p8 = scmp.ne.s32.totalorder %s188_s1, %s83_s25  ;;  %p87_p9 = scmp.lt.u32.totalorder %s83_s25, %s188_s1 }
  0x16   :  { %p89_p10 = pnand %p87_p9, %p84_p8 }
  0x18   :  { %92 = shalt.err (!%p89_p10)
}
  0x19   :  { %s93_s30 = scalar_lea.vmem %s27_s12, 128  ;;  %p98_p12 = scmp.lt.s32.totalorder %s27_s12, %s27_s12 }
  0x1a   :  { %p94_p11 = scmp.ne.s32.totalorder %s27_s12, %s93_s30  ;;  %p99_p13 = scmp.lt.s32.totalorder %s93_s30, %s93_s30 }
  0x1c   :  { %p100_p0 = por %p99_p13, %p98_p12 }
  0x1e   :  { %p101_p1 = pnand %p100_p0, %p94_p11 }
  0x20   :  { %104 = shalt.err (!%p101_p1)
}
  0x21   :  { %29 = dma.hbm_to_vmem [thread:$0]  %s188_s1, 128, %s27_s12, [#allocation6]  }
  0x22   :  { %127 = dma.done.wait [#allocation3], 128  }
  0x23   :  { %128 = vsyncadd [#allocation3], 4294967168 }
  0x24   :  { %129 = dma.done.wait [#allocation6], 128  }
  0x25   :  { %130 = vsyncadd [#allocation6], 4294967168  ;;  %v36_v0 = vld [vmem:[#allocation2] sm:$0xff]  ;;  %v37_v1 = vld [vmem:[#allocation5] sm:$0xff]  ;;  %s135_s4 = smov [#allocation7]   ;;  %vm40_vm0 = vcmask 261120  }
  0x26   :  { %s48_s5 = sshll.u32 %s135_s4, 4  ;;  %v38_v2 = vsub.f32 %v36_v0, %v37_v1  ;;  %s49_s5 = int_to_ptr.vmem [resolvable:$true] %s48_s5 }
  0x27   :  { %s105_s6 = scalar_lea.vmem %s49_s5, 128  ;;  %p110_p3 = scmp.lt.s32.totalorder %s49_s5, %s49_s5 }
  0x28   :  { %v39_v3 = vand.u32 2147483647, %v38_v2  ;;  %p106_p2 = scmp.ne.s32.totalorder %s49_s5, %s105_s6  ;;  %p111_p4 = scmp.lt.s32.totalorder %s105_s6, %s105_s6 }
  0x2a   :  { %41 = vst.msk [vmem:[#allocation7] sm:$0xff] %vm40_vm0, %v39_v3  ;;  %p112_p5 = por %p111_p4, %p110_p3 }
  0x2c   :  { %p113_p6 = pnand %p112_p5, %p106_p2 }
  0x2e   :  { %116 = shalt.err (!%p113_p6)
}
  0x2f   :  { %s117_s8 = scalar_lea.hbm %s189_s2, 128 }
  0x30   :  { %p118_p7 = scmp.ne.s32.totalorder %s189_s2, %s117_s8  ;;  %p121_p8 = scmp.lt.u32.totalorder %s117_s8, %s189_s2 }
  0x32   :  { %p123_p9 = pnand %p121_p8, %p118_p7 }
  0x34   :  { %126 = shalt.err (!%p123_p9)
}
  0x35   :  { %51 = dma.vmem_to_hbm [thread:$0]  %s49_s5, 128, %s189_s2, [#allocation4]  }
  0x36   :  { %131 = dma.done.wait [#allocation4], 128  }
  0x37   :  { %132 = vsyncadd [#allocation4], 4294967168 }
  0x38   :  { %55 = vsyncpa [#allocation3], 1 }
  0x39   :  { %56 = vsyncpa [#allocation6], 1 }
  0x3a   :  { %57 = vsyncpa [#allocation4], 1 }

</bundles_post_ra>
